<compile_context>
chip_gen: v7x
topology: tpu7x:2x2x1
jax: 0.10.0
libtpu: 0.0.40
codegen_flags: <defaults>
</compile_context>

<pallas_src>
import functools

import jax
import jax.numpy as jnp
from jax.experimental import pallas as pl
from jax.experimental.pallas import tpu as pltpu

_LANE = 128
_SUBLANE = 8
_MAX_TILE_B = 256  # per-block batch rows (double-buffered blocks stay tiny in VMEM)


def _round_up(x, m):
    return (x + m - 1) // m * m


def _pad_rows(x, rows):
    if x.shape[0] == rows:
        return x
    return jnp.pad(x, ((0, rows - x.shape[0]), (0, 0)))


# ----------------------------------------------------------------------------
# Packed parameter slab (one lane-dense VMEM-resident array for all weights)
# ----------------------------------------------------------------------------

def _pack_param_slab(params):
    """Pack all weights/biases (+ folded decoder->listener weight) into one
    (rows, 128) f32 slab. Each segment starts on an 8-row (sublane) boundary."""
    sp, dec, ls = params["speaker"], params["decoder"], params["listener"]

    # Pre-fold decoder into the listener's recons branch (associativity only).
    w_cf = dec["w"] @ ls["w1r"]                 # (comm, hid)
    b_cf = dec["b"] @ ls["w1r"] + ls["b1"]      # (1, hid)

    mats = {
        "sw1": sp["w1"], "sb1": sp["b1"], "sw2": sp["w2"], "sb2": sp["b2"],
        "dw": dec["w"], "db": dec["b"],
        "wcf": w_cf, "lw1l": ls["w1l"], "bcf": b_cf,
        "lw2": ls["w2"], "lb2": ls["b2"],
    }
    offs = {}
    rows = 0
    for name, m in mats.items():
        # TODO(synk): layers wider than 128 would need multi-tile lane packing.
        assert m.shape[1] <= _LANE, "packed slab assumes out_features <= 128"
        offs[name] = rows
        rows += _round_up(m.shape[0], _SUBLANE)
    rows = _round_up(max(rows, _SUBLANE), _SUBLANE)

    slab = jnp.zeros((rows, _LANE), jnp.float32)
    for name, m in mats.items():
        slab = slab.at[offs[name]:offs[name] + m.shape[0], :m.shape[1]].set(
            m.astype(jnp.float32))
    return slab, offs


# ----------------------------------------------------------------------------
# Kernels
# ----------------------------------------------------------------------------

def _team_kernel(sx_ref, lx_ref, p_ref, out_ref, *, offs,
                 din_s, din_l, hid, comm_dim, rec_dim, pred_dim):
    """speaker -> decoder -> listener on one batch block, packed output slab."""

    def mat(name, r, c):
        o = offs[name]
        return p_ref[o:o + r, :c]

    sx = sx_ref[...]
    lx = lx_ref[...]

    # --- speaker ---
    h_spk = jnp.maximum(
        jnp.dot(sx, mat("sw1", din_s, hid), preferred_element_type=jnp.float32)
        + mat("sb1", 1, hid), 0.0)
    cm = (jnp.dot(h_spk, mat("sw2", hid, comm_dim),
                  preferred_element_type=jnp.float32)
          + mat("sb2", 1, comm_dim))
    # Per-row partial of the speaker loss (sum of comm^2); wrapper finishes the
    # mean so the reduction is correct under the parallel batch grid.
    loss_row = jnp.sum(cm * cm, axis=-1, keepdims=True)

    # --- decoder (recons is a returned output) ---
    recons = (jnp.dot(cm, mat("dw", comm_dim, rec_dim),
                      preferred_element_type=jnp.float32)
              + mat("db", 1, rec_dim))

    # --- listener, decoder pre-folded: relu(cm@Wcf + lx@W1l + bcf) @ W2 + b2 ---
    h_lst = jnp.maximum(
        jnp.dot(cm, mat("wcf", comm_dim, hid), preferred_element_type=jnp.float32)
        + jnp.dot(lx, mat("lw1l", din_l, hid), preferred_element_type=jnp.float32)
        + mat("bcf", 1, hid), 0.0)
    pred = (jnp.dot(h_lst, mat("lw2", hid, pred_dim),
                    preferred_element_type=jnp.float32)
            + mat("lb2", 1, pred_dim))

    # --- pack [prediction | recons | info | loss | zero-pad] via static stores ---
    # info = post-ReLU speaker hidden activations.
    # TODO(synk): if the reference speaker exposes pre-activation hiddens as
    #             `info`, pack (x@W1+b1) instead of the ReLU'd value.
    o1 = pred_dim
    o2 = o1 + rec_dim
    o3 = o2 + hid
    used = o3 + 1
    out_ref[:, 0:o1] = pred
    out_ref[:, o1:o2] = recons
    out_ref[:, o2:o3] = h_spk
    out_ref[:, o3:used] = loss_row
    if used < out_ref.shape[1]:
        out_ref[:, used:] = jnp.zeros(
            (sx.shape[0], out_ref.shape[1] - used), jnp.float32)


def _pred_from_comms_kernel(cm_ref, lx_ref, p_ref, out_ref, *, offs,
                            din_l, hid, comm_dim, pred_dim):
    """decoder -> listener (decoder folded), packed output slab."""

    def mat(name, r, c):
        o = offs[name]
        return p_ref[o:o + r, :c]

    cm = cm_ref[...]
    lx = lx_ref[...]
    h = jnp.maximum(
        jnp.dot(cm, mat("wcf", comm_dim, hid), preferred_element_type=jnp.float32)
        + jnp.dot(lx, mat("lw1l", din_l, hid), preferred_element_type=jnp.float32)
        + mat("bcf", 1, hid), 0.0)
    pred = (jnp.dot(h, mat("lw2", hid, pred_dim),
                    preferred_element_type=jnp.float32)
            + mat("lb2", 1, pred_dim))

    out_ref[:, 0:pred_dim] = pred
    if pred_dim < out_ref.shape[1]:
        out_ref[:, pred_dim:] = jnp.zeros(
            (cm.shape[0], out_ref.shape[1] - pred_dim), jnp.float32)


# ----------------------------------------------------------------------------
# Wrappers
# ----------------------------------------------------------------------------

def team_forward(speaker_x, listener_x, params):
    """Mirrors Team.forward: returns (prediction, speaker_loss, info, recons)."""
    B = speaker_x.shape[0]
    sp, dec, ls = params["speaker"], params["decoder"], params["listener"]

    din_s, hid = sp["w1"].shape
    comm_dim = sp["w2"].shape[1]
    rec_dim = dec["w"].shape[1]
    din_l = ls["w1l"].shape[0]
    pred_dim = ls["w2"].shape[1]

    used = pred_dim + rec_dim + hid + 1
    out_lanes = _round_up(used, _LANE)

    tile_b = min(_round_up(max(B, 1), _SUBLANE), _MAX_TILE_B)
    b_pad = _round_up(max(B, 1), tile_b)     # no copy when B is already aligned
    sx = _pad_rows(speaker_x, b_pad)
    lx = _pad_rows(listener_x, b_pad)

    slab_p, offs = _pack_param_slab(params)

    flops = 2 * b_pad * (din_s * hid + hid * comm_dim + comm_dim * rec_dim
                         + comm_dim * hid + din_l * hid + hid * pred_dim)
    bytes_accessed = (sx.size + lx.size + slab_p.size + b_pad * out_lanes) * 4

    kernel = functools.partial(
        _team_kernel, offs=offs, din_s=din_s, din_l=din_l, hid=hid,
        comm_dim=comm_dim, rec_dim=rec_dim, pred_dim=pred_dim)

    slab = pl.pallas_call(
        kernel,
        out_shape=jax.ShapeDtypeStruct((b_pad, out_lanes), jnp.float32),
        grid=(b_pad // tile_b,),
        in_specs=[
            pl.BlockSpec((tile_b, din_s), lambda i: (i, 0)),
            pl.BlockSpec((tile_b, din_l), lambda i: (i, 0)),
            pl.BlockSpec(slab_p.shape, lambda i: (0, 0)),   # resident params
        ],
        out_specs=pl.BlockSpec((tile_b, out_lanes), lambda i: (i, 0)),
        compiler_params=pltpu.CompilerParams(dimension_semantics=("parallel",)),
        cost_estimate=pl.CostEstimate(
            flops=flops, transcendentals=0, bytes_accessed=bytes_accessed),
    )(sx, lx, slab_p)

    o1 = pred_dim
    o2 = o1 + rec_dim
    o3 = o2 + hid
    prediction = slab[:B, :o1]
    recons = slab[:B, o1:o2]
    info = slab[:B, o2:o3]
    # Finish the speaker loss (per-row partials -> mean over real rows only).
    speaker_loss = jnp.sum(slab[:B, o3]) / float(max(B, 1) * comm_dim)
    return prediction, speaker_loss, info, recons


def team_pred_from_comms(comm, listener_x, params):
    """Mirrors Team.pred_from_comms."""
    B = comm.shape[0]
    dec, ls = params["decoder"], params["listener"]

    comm_dim = dec["w"].shape[0]
    hid = ls["w1r"].shape[1]
    din_l = ls["w1l"].shape[0]
    pred_dim = ls["w2"].shape[1]
    out_lanes = _round_up(max(pred_dim, 1), _LANE)

    tile_b = min(_round_up(max(B, 1), _SUBLANE), _MAX_TILE_B)
    b_pad = _round_up(max(B, 1), tile_b)
    cm = _pad_rows(comm, b_pad)
    lx = _pad_rows(listener_x, b_pad)

    slab_p, offs = _pack_param_slab(params)

    flops = 2 * b_pad * (comm_dim * hid + din_l * hid + hid * pred_dim)
    bytes_accessed = (cm.size + lx.size + slab_p.size + b_pad * out_lanes) * 4

    kernel = functools.partial(
        _pred_from_comms_kernel, offs=offs, din_l=din_l, hid=hid,
        comm_dim=comm_dim, pred_dim=pred_dim)

    slab = pl.pallas_call(
        kernel,
        out_shape=jax.ShapeDtypeStruct((b_pad, out_lanes), jnp.float32),
        grid=(b_pad // tile_b,),
        in_specs=[
            pl.BlockSpec((tile_b, comm_dim), lambda i: (i, 0)),
            pl.BlockSpec((tile_b, din_l), lambda i: (i, 0)),
            pl.BlockSpec(slab_p.shape, lambda i: (0, 0)),
        ],
        out_specs=pl.BlockSpec((tile_b, out_lanes), lambda i: (i, 0)),
        compiler_params=pltpu.CompilerParams(dimension_semantics=("parallel",)),
        cost_estimate=pl.CostEstimate(
            flops=flops, transcendentals=0, bytes_accessed=bytes_accessed),
    )(cm, lx, slab_p)

    return slab[:B, :pred_dim]


# ----------------------------------------------------------------------------
# Deterministic parameter init
# ----------------------------------------------------------------------------

def init_params(key, d_speaker, d_listener, hidden, comm_dim, pred_dim):
    ks = jax.random.split(key, 8)

    def w(k, i, o):
        return (jax.random.normal(k, (i, o), jnp.float32) / jnp.sqrt(i)).astype(jnp.float32)

    return {
        "speaker": {
            "w1": w(ks[0], d_speaker, hidden),
            "b1": jnp.zeros((1, hidden), jnp.float32),
            "w2": w(ks[1], hidden, comm_dim),
            "b2": jnp.zeros((1, comm_dim), jnp.float32),
        },
        "decoder": {
            "w": w(ks[2], comm_dim, d_speaker),
            "b": jnp.zeros((1, d_speaker), jnp.float32),
        },
        "listener": {
            "w1r": w(ks[3], d_speaker, hidden),
            "w1l": w(ks[4], d_listener, hidden),
            "b1": jnp.zeros((1, hidden), jnp.float32),
            "w2": w(ks[5], hidden, pred_dim),
            "b2": jnp.zeros((1, pred_dim), jnp.float32),
        },
    }


# ----------------------------------------------------------------------------
# Main
# ----------------------------------------------------------------------------

if __name__ == "__main__":
    B = 2            # batch
    D_SPK = 32       # speaker input dim (== recons dim)
    D_LST = 32       # listener input dim
    HID = 32         # hidden dim
    COMM = 16        # communication-channel dim
    PRED = 8         # prediction dim

    key = jax.random.PRNGKey(0)
    k_params, k_sx, k_lx = jax.random.split(key, 3)

    params = init_params(k_params, D_SPK, D_LST, HID, COMM, PRED)
    speaker_x = jax.random.normal(k_sx, (B, D_SPK), jnp.float32)
    listener_x = jax.random.normal(k_lx, (B, D_LST), jnp.float32)

    prediction, speaker_loss, info, recons = jax.block_until_ready(
        jax.jit(team_forward)(speaker_x, listener_x, params)
    )

    # Also exercise pred_from_comms path.
    comm_probe = jax.random.normal(jax.random.PRNGKey(1), (B, COMM), jnp.float32)
    pred2 = jax.block_until_ready(
        jax.jit(team_pred_from_comms)(comm_probe, listener_x, params)
    )

    # Pure-JAX reference check (un-folded, matches the PyTorch composition).
    def _ref(sx, lx, p):
        sp, dec, ls = p["speaker"], p["decoder"], p["listener"]
        h = jnp.maximum(sx @ sp["w1"] + sp["b1"], 0.0)
        c = h @ sp["w2"] + sp["b2"]
        loss = jnp.mean(c * c)
        r = c @ dec["w"] + dec["b"]
        hl = jnp.maximum(r @ ls["w1r"] + lx @ ls["w1l"] + ls["b1"], 0.0)
        return hl @ ls["w2"] + ls["b2"], loss, h, r

    def _ref_pfc(c, lx, p):
        dec, ls = p["decoder"], p["listener"]
        r = c @ dec["w"] + dec["b"]
        hl = jnp.maximum(r @ ls["w1r"] + lx @ ls["w1l"] + ls["b1"], 0.0)
        return hl @ ls["w2"] + ls["b2"]

    rp, rl, ri, rr = _ref(speaker_x, listener_x, params)
    rp2 = _ref_pfc(comm_probe, listener_x, params)

    assert prediction.shape == (B, PRED)
    assert recons.shape == (B, D_SPK)
    assert info.shape == (B, HID)
    assert speaker_loss.shape == ()
    assert pred2.shape == (B, PRED)
    # Decoder->listener fold reorders fp associativity; tolerance covers it.
    assert jnp.allclose(prediction, rp, atol=1e-4, rtol=1e-4)
    assert jnp.allclose(recons, rr, atol=1e-4, rtol=1e-4)
    assert jnp.allclose(info, ri, atol=1e-4, rtol=1e-4)
    assert jnp.allclose(speaker_loss, rl, atol=1e-5, rtol=1e-5)
    assert jnp.allclose(pred2, rp2, atol=1e-4, rtol=1e-4)
    print("KERNEL_OK")
</pallas_src>

<mosaic_0001>
module attributes {stable_mosaic.version = 11 : i64} {
  func.func @_team_kernel(%arg0: i32, %arg1: memref<8x32xf32, #tpu.memory_space<vmem>>, %arg2: memref<8x32xf32, #tpu.memory_space<vmem>>, %arg3: memref<200x128xf32, #tpu.memory_space<vmem>>, %arg4: memref<8x128xf32, #tpu.memory_space<vmem>>) attributes {dimension_semantics = [#tpu.dimension_semantics<parallel>], iteration_bounds = array<i64: 1>, scalar_prefetch = 0 : i64, scratch_operands = 0 : i64, tpu.core_type = #tpu.core_type<tc>, window_params = [{transform_indices = @transform_0, window_bounds = array<i64: 8, 32>}, {transform_indices = @transform_1, window_bounds = array<i64: 8, 32>}, {pipeline_mode = #tpu.pipeline_mode<synchronous>, transform_indices = @transform_2, window_bounds = array<i64: 200, 128>}, {transform_indices = @transform_3, window_bounds = array<i64: 8, 128>}]} {
    %c0 = arith.constant 0 : index
    %c0_0 = arith.constant 0 : index
    %0 = vector.load %arg1[%c0, %c0_0] : memref<8x32xf32, #tpu.memory_space<vmem>>, vector<8x32xf32>
    %c0_1 = arith.constant 0 : index
    %c0_2 = arith.constant 0 : index
    %1 = vector.load %arg2[%c0_1, %c0_2] : memref<8x32xf32, #tpu.memory_space<vmem>>, vector<8x32xf32>
    %c0_3 = arith.constant 0 : index
    %c0_4 = arith.constant 0 : index
    %2 = vector.load %arg3[%c0_3, %c0_4] : memref<200x128xf32, #tpu.memory_space<vmem>>, vector<32x32xf32>
    %cst = arith.constant dense<0.000000e+00> : vector<8x32xf32>
    %3 = tpu.matmul %0, %2, %cst {dimension_numbers = #tpu.dot_dimension_numbers<[1], [0], [0], [1], [0, 0, 1, 1], [], []>} : vector<8x32xf32>, vector<32x32xf32>, vector<8x32xf32> -> vector<8x32xf32>
    %c32 = arith.constant 32 : index
    %c0_5 = arith.constant 0 : index
    %4 = vector.load %arg3[%c32, %c0_5] : memref<200x128xf32, #tpu.memory_space<vmem>>, vector<1x32xf32>
    %5 = vector.broadcast %4 : vector<1x32xf32> to vector<8x32xf32>
    %6 = arith.addf %3, %5 : vector<8x32xf32>
    %cst_6 = arith.constant 0.000000e+00 : f32
    %7 = vector.broadcast %cst_6 : f32 to vector<8x32xf32>
    %8 = arith.maximumf %6, %7 : vector<8x32xf32>
    %c40 = arith.constant 40 : index
    %c0_7 = arith.constant 0 : index
    %9 = vector.load %arg3[%c40, %c0_7] : memref<200x128xf32, #tpu.memory_space<vmem>>, vector<32x16xf32>
    %cst_8 = arith.constant dense<0.000000e+00> : vector<8x16xf32>
    %10 = tpu.matmul %8, %9, %cst_8 {dimension_numbers = #tpu.dot_dimension_numbers<[1], [0], [0], [1], [0, 0, 1, 1], [], []>} : vector<8x32xf32>, vector<32x16xf32>, vector<8x16xf32> -> vector<8x16xf32>
    %c72 = arith.constant 72 : index
    %c0_9 = arith.constant 0 : index
    %11 = vector.load %arg3[%c72, %c0_9] : memref<200x128xf32, #tpu.memory_space<vmem>>, vector<1x16xf32>
    %12 = vector.broadcast %11 : vector<1x16xf32> to vector<8x16xf32>
    %13 = arith.addf %10, %12 : vector<8x16xf32>
    %14 = arith.mulf %13, %13 : vector<8x16xf32>
    %cst_10 = arith.constant dense<0.000000e+00> : vector<8xf32>
    %15 = vector.multi_reduction <add>, %14, %cst_10 [1] : vector<8x16xf32> to vector<8xf32>
    %16 = vector.shape_cast %15 : vector<8xf32> to vector<8x1xf32>
    %c80 = arith.constant 80 : index
    %c0_11 = arith.constant 0 : index
    %17 = vector.load %arg3[%c80, %c0_11] : memref<200x128xf32, #tpu.memory_space<vmem>>, vector<16x32xf32>
    %cst_12 = arith.constant dense<0.000000e+00> : vector<8x32xf32>
    %18 = tpu.matmul %13, %17, %cst_12 {dimension_numbers = #tpu.dot_dimension_numbers<[1], [0], [0], [1], [0, 0, 1, 1], [], []>} : vector<8x16xf32>, vector<16x32xf32>, vector<8x32xf32> -> vector<8x32xf32>
    %c96 = arith.constant 96 : index
    %c0_13 = arith.constant 0 : index
    %19 = vector.load %arg3[%c96, %c0_13] : memref<200x128xf32, #tpu.memory_space<vmem>>, vector<1x32xf32>
    %20 = vector.broadcast %19 : vector<1x32xf32> to vector<8x32xf32>
    %21 = arith.addf %18, %20 : vector<8x32xf32>
    %c104 = arith.constant 104 : index
    %c0_14 = arith.constant 0 : index
    %22 = vector.load %arg3[%c104, %c0_14] : memref<200x128xf32, #tpu.memory_space<vmem>>, vector<16x32xf32>
    %cst_15 = arith.constant dense<0.000000e+00> : vector<8x32xf32>
    %23 = tpu.matmul %13, %22, %cst_15 {dimension_numbers = #tpu.dot_dimension_numbers<[1], [0], [0], [1], [0, 0, 1, 1], [], []>} : vector<8x16xf32>, vector<16x32xf32>, vector<8x32xf32> -> vector<8x32xf32>
    %c120 = arith.constant 120 : index
    %c0_16 = arith.constant 0 : index
    %24 = vector.load %arg3[%c120, %c0_16] : memref<200x128xf32, #tpu.memory_space<vmem>>, vector<32x32xf32>
    %cst_17 = arith.constant dense<0.000000e+00> : vector<8x32xf32>
    %25 = tpu.matmul %1, %24, %cst_17 {dimension_numbers = #tpu.dot_dimension_numbers<[1], [0], [0], [1], [0, 0, 1, 1], [], []>} : vector<8x32xf32>, vector<32x32xf32>, vector<8x32xf32> -> vector<8x32xf32>
    %26 = arith.addf %23, %25 : vector<8x32xf32>
    %c152 = arith.constant 152 : index
    %c0_18 = arith.constant 0 : index
    %27 = vector.load %arg3[%c152, %c0_18] : memref<200x128xf32, #tpu.memory_space<vmem>>, vector<1x32xf32>
    %28 = vector.broadcast %27 : vector<1x32xf32> to vector<8x32xf32>
    %29 = arith.addf %26, %28 : vector<8x32xf32>
    %cst_19 = arith.constant 0.000000e+00 : f32
    %30 = vector.broadcast %cst_19 : f32 to vector<8x32xf32>
    %31 = arith.maximumf %29, %30 : vector<8x32xf32>
    %c160 = arith.constant 160 : index
    %c0_20 = arith.constant 0 : index
    %32 = vector.load %arg3[%c160, %c0_20] : memref<200x128xf32, #tpu.memory_space<vmem>>, vector<32x8xf32>
    %cst_21 = arith.constant dense<0.000000e+00> : vector<8x8xf32>
    %33 = tpu.matmul %31, %32, %cst_21 {dimension_numbers = #tpu.dot_dimension_numbers<[1], [0], [0], [1], [0, 0, 1, 1], [], []>} : vector<8x32xf32>, vector<32x8xf32>, vector<8x8xf32> -> vector<8x8xf32>
    %c192 = arith.constant 192 : index
    %c0_22 = arith.constant 0 : index
    %34 = vector.load %arg3[%c192, %c0_22] : memref<200x128xf32, #tpu.memory_space<vmem>>, vector<1x8xf32>
    %35 = vector.broadcast %34 : vector<1x8xf32> to vector<8x8xf32>
    %36 = arith.addf %33, %35 : vector<8x8xf32>
    %c0_23 = arith.constant 0 : index
    %c0_24 = arith.constant 0 : index
    %37 = vector.load %arg4[%c0_23, %c0_24] : memref<8x128xf32, #tpu.memory_space<vmem>>, vector<8x8xf32>
    tpu.vector_store %arg4[%c0_23, %c0_24], %36 {strides = array<i32>} : memref<8x128xf32, #tpu.memory_space<vmem>>, vector<8x8xf32>,
    %c0_25 = arith.constant 0 : index
    %c8 = arith.constant 8 : index
    %38 = vector.load %arg4[%c0_25, %c8] : memref<8x128xf32, #tpu.memory_space<vmem>>, vector<8x32xf32>
    tpu.vector_store %arg4[%c0_25, %c8], %21 {strides = array<i32>} : memref<8x128xf32, #tpu.memory_space<vmem>>, vector<8x32xf32>,
    %c0_26 = arith.constant 0 : index
    %c40_27 = arith.constant 40 : index
    %39 = vector.load %arg4[%c0_26, %c40_27] : memref<8x128xf32, #tpu.memory_space<vmem>>, vector<8x32xf32>
    tpu.vector_store %arg4[%c0_26, %c40_27], %8 {strides = array<i32>} : memref<8x128xf32, #tpu.memory_space<vmem>>, vector<8x32xf32>,
    %c0_28 = arith.constant 0 : index
    %c72_29 = arith.constant 72 : index
    %40 = vector.load %arg4[%c0_28, %c72_29] : memref<8x128xf32, #tpu.memory_space<vmem>>, vector<8x1xf32>
    tpu.vector_store %arg4[%c0_28, %c72_29], %16 {strides = array<i32>} : memref<8x128xf32, #tpu.memory_space<vmem>>, vector<8x1xf32>,
    %cst_30 = arith.constant 0.000000e+00 : f32
    %41 = vector.broadcast %cst_30 : f32 to vector<8x55xf32>
    %c0_31 = arith.constant 0 : index
    %c73 = arith.constant 73 : index
    %42 = vector.load %arg4[%c0_31, %c73] : memref<8x128xf32, #tpu.memory_space<vmem>>, vector<8x55xf32>
    tpu.vector_store %arg4[%c0_31, %c73], %41 {strides = array<i32>} : memref<8x128xf32, #tpu.memory_space<vmem>>, vector<8x55xf32>,
    return
  }
  func.func @transform_0(%arg0: i32) -> (i32, i32) {
    %c0_i32 = arith.constant 0 : i32
    %c0_i32_0 = arith.constant 0 : i32
    return %arg0, %c0_i32 : i32, i32
  }
  func.func @transform_1(%arg0: i32) -> (i32, i32) {
    %c0_i32 = arith.constant 0 : i32
    %c0_i32_0 = arith.constant 0 : i32
    return %arg0, %c0_i32 : i32, i32
  }
  func.func @transform_2(%arg0: i32) -> (i32, i32) {
    %c0_i32 = arith.constant 0 : i32
    %c0_i32_0 = arith.constant 0 : i32
    %c0_i32_1 = arith.constant 0 : i32
    return %c0_i32, %c0_i32_0 : i32, i32
  }
  func.func @transform_3(%arg0: i32) -> (i32, i32) {
    %c0_i32 = arith.constant 0 : i32
    %c0_i32_0 = arith.constant 0 : i32
    return %arg0, %c0_i32 : i32, i32
  }
}

</mosaic_0001>

<bundles_post_ra>
// kernel: team_forward.1
= control target key start
LH: loop header
LB: loop body
LE: loop exit
PB: predicated region body
PF: predicated region fallthrough
CT: control target
= control target key end

     0   :  { %v656_v0 = vmov 0.0|0.0   ;;  %vm657_vm0 = vmmov 0   ;;  %v658_v4 = vmov 0.0   ;;  %vm25_vm1 = vcmask 261120   ;;  %s659_s8 = smov 40   ;;  %s660_s6 = smov 8   ;;  %s804_s2 = inlined_call_operand.vmem [shape: f32[200,128], index: 2, kind: input, shape index: {}]   ;;  %s805_s0 = inlined_call_operand.vmem [shape: f32[8,32], index: 0, kind: input, shape index: {}]   ;;  %s806_s1 = inlined_call_operand.vmem [shape: f32[8,32], index: 1, kind: input, shape index: {}]   ;;  %s807_s3 = inlined_call_operand.vmem [shape: f32[8,128], index: 3, kind: output, shape index: {}]  }
   0x1   :  { %621 = vmatprep.subr.bf16.mxu0 %v656_v0  ;;  %v16_v1 = vld [vmem:[%s804_s2] sm:$0xff]  ;;  %v17_v2 = vld [vmem:[%s804_s2 + $0x8] sm:$0xff]  ;;  %v18_v3 = vld [vmem:[%s804_s2 + $0x10] sm:$0xff]  ;;  %571 = vmatprep.mubr.msk.f32.mxu0 %vm657_vm0, %v658_v4  ;;  %vm183_vm2 = vcmask 130048   ;;  %vm505_vm3 = vcmask 64512   ;;  %vm511_vm4 = vcmask 326720  }
   0x2   :  { %v622_v5 = vpack.c.bf16 %v17_v2, %v16_v1  ;;  %v19_v6 = vld [vmem:[%s804_s2 + $0x18] sm:$0xff]  ;;  %627 = vmatprep.subr.bf16.mxu1 %v656_v0  ;;  %v100_v7 = vld [vmem:[%s804_s2 + $0x28] sm:$0xff]  ;;  %582 = vmatprep.mubr.msk.f32.mxu1 %vm657_vm0, %v658_v4  ;;  %v101_v8 = vld [vmem:[%s804_s2 + $0x30] sm:$0xff]  ;;  %vm516_vm5 = vcmask 589120   ;;  %vm518_vm6 = vcmask 597568   ;;  %vm520_vm7 = vcmask 1048136  }
   0x3   :  { %v625_v9 = vpack.c.bf16 %v19_v6, %v18_v3  ;;  %v628_v10 = vpack.c.bf16 %v101_v8, %v100_v7  ;;  %v14_v11 = vld [vmem:[%s805_s0] sm:$0xff]  ;;  %v102_v12 = vld [vmem:[%s804_s2 + $0x38] sm:$0xff]  ;;  %v187_v16 = vld [vmem:[%s804_s2 + $0x50] sm:$0xff] }
   0x4   :  { %623 = vmatpush3.bf16.msra.mxu0 %v622_v5  ;;  %v103_v13 = vld [vmem:[%s804_s2 + $0x40] sm:$0xff]  ;;  %v188_v17 = vld [vmem:[%s804_s2 + $0x58] sm:$0xff]  ;;  %v267_v23 = vld [vmem:[%s804_s2 + $0x68] sm:$0xff] }
   0x5   :  { %624 = vmatprep.subr.bf16.mxu0 %v656_v0  ;;  %629 = vmatpush3.bf16.msra.mxu1 %v628_v10  ;;  %v631_v14 = vpack.c.bf16 %v103_v13, %v102_v12  ;;  %v526_v15 = vld [vmem:[%s804_s2 + $0x20] ss:$0 sm:$0xff]  ;;  %v634_v21 = vpack.c.bf16 %v188_v17, %v187_v16  ;;  %v268_v24 = vld [vmem:[%s804_s2 + $0x70] sm:$0xff]  ;;  %v269_v26 = vld [vmem:[%s804_s2 + $0x78] sm:$0xff] }
   0x6   :  { %630 = vmatprep.subr.bf16.mxu1 %v656_v0  ;;  %v643_v25 = vpack.c.bf16 %v268_v24, %v267_v23  ;;  %v270_v27 = vld [vmem:[%s804_s2 + $0x80] sm:$0xff]  ;;  %v528_v28 = vld [vmem:[%s804_s2 + $0x48] ss:$0 sm:$0xff]  ;;  %v272_v34 = vld [vmem:[%s804_s2 + $0x90] sm:$0xff] }
   0x7   :  { %v637_v30 = vpack.c.bf16 %v270_v27, %v269_v26  ;;  %v271_v33 = vld [vmem:[%s804_s2 + $0x88] sm:$0xff]  ;;  %v15_v38 = vld [vmem:[%s806_s1] sm:$0xff]  ;;  %v425_v42 = vld [vmem:[%s804_s2 + $0xb0] sm:$0xff] }
   0x8   :  { %626 = vmatpush3.bf16.msra.mxu0 %v625_v9  ;;  %v640_v36 = vpack.c.bf16 %v272_v34, %v271_v33  ;;  %v423_v39 = vld [vmem:[%s804_s2 + $0xa0] sm:$0xff]  ;;  %v424_v40 = vld [vmem:[%s804_s2 + $0xa8] sm:$0xff]  ;;  %v426_v43 = vld [vmem:[%s804_s2 + $0xb8] sm:$0xff] }
   0x9   :  { %642 = vmatprep.subr.bf16.mxu0 %v656_v0  ;;  %632 = vmatpush3.bf16.msra.mxu1 %v631_v14  ;;  %v646_v41 = vpack.c.bf16 %v424_v40, %v423_v39  ;;  %v649_v44 = vpack.c.bf16 %v426_v43, %v425_v42  ;;  %v530_v45 = vld [vmem:[%s804_s2 + $0x60] ss:$0 sm:$0xff]  ;;  %v534_v52 = vld [vmem:[%s804_s2 + $0x98] ss:$0 sm:$0xff] }
   0xa   :  { %633 = vmatprep.subr.bf16.mxu1 %v656_v0  ;;  %v535_v57 = vld [vmem:[%s804_s2 + $0xc0] ss:$0 sm:$0xff] }
   0xb   :  { %572 = vmatmul.mubr.msk.f32.vlgmr.msra.gmra.mrb[0].mxu0 %vm25_vm1, %v14_v11 }
   0xc   :  { %607 = vmatprep.mubr.msk.f32.mxu0 %vm657_vm0, %v658_v4  ;;  %644 = vmatpush3.bf16.msra.mxu0 %v643_v25 }
   0xd   :  { %645 = vmatprep.subr.bf16.mxu0 %v656_v0 }
  0xde   :  { %v95_v18 = vpop.f32.mrb[0].mxu0 }
  0xdf   :  { %v96_v19 = vadd.f32 %v526_v15, %v95_v18  ;;  %v573_v20 = vpop.f32.mrb[1].mxu0 }
  0xe1   :  { %v99_v22 = vmax.f32 %v96_v19, 0.0 }
  0xe3   :  { %513 = vrot.lane.b32.xlu1 %v99_v22, %s659_s8  ;;  %583 = vmatmul.mubr.msk.f32.vlgmr.msra.gmra.mrb[0].mxu1 %vm25_vm1, %v99_v22 }
  0xe4   :  { %635 = vmatpush3.bf16.msra.mxu1 %v634_v21  ;;  %589 = vmatprep.mubr.msk.f32.mxu1 %vm657_vm0, %v658_v4 }
  0xe5   :  { %636 = vmatprep.subr.bf16.mxu1 %v656_v0 }
 0x155   :  { %v514_v63 = vpop.permute.xlu1 %513 }
 0x1b6   :  { %v178_v29 = vpop.f32.mrb[0].mxu1 }
 0x1b7   :  { %v179_v31 = vadd.f32 %v528_v28, %v178_v29  ;;  %v584_v32 = vpop.f32.mrb[1].mxu1 }
 0x1b9   :  { %590 = vmatmul.mubr.msk.f32.vlgmr.msra.gmra.mrb[2].mxu1 %vm183_vm2, %v179_v31  ;;  %608 = vmatmul.mubr.msk.f32.vlgmr.msra.gmra.mrb[2].mxu0 %vm183_vm2, %v179_v31  ;;  %v182_v35 = vmul.f32 %v179_v31, %v179_v31 }
 0x1ba   :  { %638 = vmatpush3.bf16.msra.mxu1 %v637_v30  ;;  %600 = vmatprep.mubr.msk.f32.mxu1 %vm657_vm0, %v658_v4 }
 0x1bb   :  { %639 = vmatprep.subr.bf16.mxu1 %v656_v0  ;;  %v184_v37 = vsel %vm183_vm2, %v182_v35, 0.0  ;;  %618 = vmatprep.mubr.msk.f32.mxu0 %vm657_vm0, %v658_v4 }
 0x1bc   :  { %185 = vadd.xlane.f32.xlu0 %v184_v37  ;;  %647 = vmatpush3.bf16.msra.mxu0 %v646_v41 }
 0x1bd   :  { %648 = vmatprep.subr.bf16.mxu0 %v656_v0 }
 0x1be   :  { %641 = vmatpush3.bf16.msra.mxu1 %v640_v36 }
 0x1c0   :  { %650 = vmatpush3.bf16.msra.mxu0 %v649_v44 }
 0x1c1   :  { %601 = vmatmul.mubr.msk.f32.vlgmr.msra.gmra.mrb[4].mxu1 %vm25_vm1, %v15_v38 }
 0x249   :  { %v186_v58 = vpop.xlane.xlu0 %185 }
 0x28c   :  { %v263_v46 = vpop.f32.mrb[2].mxu1  ;;  %v412_v47 = vpop.f32.mrb[2].mxu0 }
 0x28d   :  { %v264_v48 = vadd.f32 %v530_v45, %v263_v46  ;;  %v591_v49 = vpop.f32.mrb[3].mxu1  ;;  %v609_v50 = vpop.f32.mrb[3].mxu0 }
 0x28f   :  { %508 = vrot.lane.b32.xlu0 %v264_v48, %s660_s6 }
 0x294   :  { %v342_v51 = vpop.f32.mrb[4].mxu1 }
 0x295   :  { %v413_v53 = vadd.f32 %v412_v47, %v342_v51  ;;  %v602_v54 = vpop.f32.mrb[5].mxu1 }
 0x297   :  { %v421_v55 = vadd.f32 %v534_v52, %v413_v53 }
 0x299   :  { %v422_v56 = vmax.f32 %v421_v55, 0.0 }
 0x29b   :  { %619 = vmatmul.mubr.msk.f32.vlgmr.msra.gmra.mrb[4].mxu0 %vm25_vm1, %v422_v56 }
 0x301   :  { %v509_v62 = vpop.permute.xlu0 %508 }
 0x36e   :  { %v501_v59 = vpop.f32.mrb[4].mxu0 }
 0x36f   :  { %v502_v60 = vadd.f32 %v535_v57, %v501_v59  ;;  %v620_v61 = vpop.f32.mrb[5].mxu0 }
 0x371   :  { %506 = vst.msk [vmem:[%s807_s3] sm:$0xff] %vm505_vm3, %v502_v60 }
 0x372   :  { %512 = vst.msk [vmem:[%s807_s3] sm:$0xff] %vm511_vm4, %v509_v62 }
 0x373   :  { %517 = vst.msk [vmem:[%s807_s3] sm:$0xff] %vm516_vm5, %v514_v63 }
 0x374   :  { %519 = vst.msk [vmem:[%s807_s3] sm:$0xff] %vm518_vm6, %v186_v58 }
 0x375   :  { %521 = vst.msk [vmem:[%s807_s3] sm:$0xff] %vm520_vm7, %v658_v4 }

</bundles_post_ra>
